<compile_context>
chip_gen: v5e
topology: v5e:2x2
jax: 0.10.0
libtpu: 0.0.40
codegen_flags: <defaults>
</compile_context>

<pallas_src>
import functools
import math

import jax
import jax.numpy as jnp
from jax.experimental import pallas as pl
from jax.experimental.pallas import tpu as pltpu


_MAX_TOKENS_PER_TILE = 1024             # upper bound on tokens per grid step
_TILE_BYTES_BUDGET = 2 * 1024 * 1024    # target size of one (T, E) output block
_VMEM_TABLE_BUDGET = 4 * 1024 * 1024    # resident-table path if table fits here
_N_DMA_SLOTS = 16                       # outstanding row DMAs (power of two)
_UNROLL = 8                             # resident-gather manual unroll factor


def _round_up(x, m):
    return ((x + m - 1) // m) * m


def _pick_tile(n_tokens, embed_dim, itemsize):
    # Largest multiple-of-8 token tile whose (T, E) block fits the budget.
    t_budget = max(8, (_TILE_BYTES_BUDGET // (embed_dim * itemsize)) // 8 * 8)
    return max(8, min(_MAX_TOKENS_PER_TILE, t_budget, _round_up(n_tokens, 8)))


# ---------------------------------------------------------------------------
# Path 1: small table, resident in VMEM. Gather via dynamic row indexing.
# ---------------------------------------------------------------------------
def _embed_resident_kernel(ids_ref, table_ref, out_ref, *, scale, tile):
    # ids_ref:   SMEM (N_pad,) int32  -- scalar-prefetched token ids.
    # table_ref: VMEM (V, E)          -- whole embedding table (resident).
    # out_ref:   VMEM (T, E)          -- dense output tile.
    base = pl.program_id(0) * tile

    @pl.loop(0, tile // _UNROLL)
    def _(i):
        t0 = i * _UNROLL
        # Static 8x unroll: 8 independent row load/store pairs per iteration.
        for j in range(_UNROLL):
            t = t0 + j
            row = ids_ref[base + t]
            out_ref[pl.ds(t, 1), :] = table_ref[pl.ds(row, 1), :] * scale


# ---------------------------------------------------------------------------
# Path 2: large table stays in HBM; manual multi-outstanding row-DMA gather.
# ---------------------------------------------------------------------------
def _embed_dma_gather_kernel(ids_ref, table_hbm, out_ref, rows_vmem, sems,
                             *, scale, tile):
    # ids_ref:   SMEM (N_pad,) int32   -- scalar-prefetched token ids.
    # table_hbm: HBM  (V, E)           -- raw table ref (memory_space=pl.ANY).
    # out_ref:   VMEM (T, E)           -- dense output tile.
    # rows_vmem: VMEM (T, E) scratch   -- gather destination.
    # sems:      DMA semaphores, _N_DMA_SLOTS-deep sliding window.
    base = pl.program_id(0) * tile

    def issue(t):
        slot = t & (_N_DMA_SLOTS - 1)
        row = ids_ref[base + t]
        pltpu.make_async_copy(
            table_hbm.at[pl.ds(row, 1), :],
            rows_vmem.at[pl.ds(t, 1), :],
            sems.at[slot],
        ).start()

    def retire(t):
        slot = t & (_N_DMA_SLOTS - 1)
        # Only shapes (not the source index) matter for the wait.
        pltpu.make_async_copy(
            table_hbm.at[pl.ds(0, 1), :],
            rows_vmem.at[pl.ds(t, 1), :],
            sems.at[slot],
        ).wait()

    # Prime the outstanding-DMA window.
    for t in range(min(_N_DMA_SLOTS, tile)):
        issue(t)

    # Slide the window: retire DMA t, refill its slot with DMA t + NSLOTS.
    @pl.loop(0, tile)
    def _(t):
        retire(t)

        @pl.when(t + _N_DMA_SLOTS < tile)
        def _():
            issue(t + _N_DMA_SLOTS)

    # All rows gathered; apply the sqrt(E) scale and emit the dense tile.
    out_ref[...] = (rows_vmem[...] * scale).astype(out_ref.dtype)


# ---------------------------------------------------------------------------
# Wrapper: matches TokenEmbedding.forward(x) = embedding(x) * sqrt(embed_dim)
# ---------------------------------------------------------------------------
def token_embedding(ids, table, *, force_dma_gather=False):
    B, S = ids.shape
    V, E = table.shape
    N = B * S
    scale = math.sqrt(E)
    itemsize = table.dtype.itemsize

    # Bounds safety: clamp ids so data-dependent row accesses stay in-table.
    flat_ids = jnp.clip(ids.reshape(N), 0, V - 1).astype(jnp.int32)

    # Token tile: multiple of 8 sublanes, sized to keep (T, E) blocks ~2 MiB.
    T = _pick_tile(N, E, itemsize)
    N_pad = _round_up(N, T)
    if N_pad != N:
        flat_ids = jnp.pad(flat_ids, (0, N_pad - N))  # pad with row 0 (valid)
    num_tiles = N_pad // T

    table_bytes = V * E * itemsize
    use_resident = (table_bytes <= _VMEM_TABLE_BUDGET) and not force_dma_gather

    compiler_params = pltpu.CompilerParams(
        dimension_semantics=("parallel",),        # token tiles are independent
        vmem_limit_bytes=32 * 1024 * 1024,
    )

    if use_resident:
        out_flat = pl.pallas_call(
            functools.partial(_embed_resident_kernel, scale=scale, tile=T),
            out_shape=jax.ShapeDtypeStruct((N_pad, E), table.dtype),
            grid_spec=pltpu.PrefetchScalarGridSpec(
                num_scalar_prefetch=1,
                grid=(num_tiles,),
                in_specs=[
                    # Whole table as one resident VMEM block (constant index).
                    pl.BlockSpec((V, E), lambda i, ids_sref: (0, 0)),
                ],
                out_specs=pl.BlockSpec((T, E), lambda i, ids_sref: (i, 0)),
            ),
            compiler_params=compiler_params,
        )(flat_ids, table)
    else:
        out_flat = pl.pallas_call(
            functools.partial(_embed_dma_gather_kernel, scale=scale, tile=T),
            out_shape=jax.ShapeDtypeStruct((N_pad, E), table.dtype),
            grid_spec=pltpu.PrefetchScalarGridSpec(
                num_scalar_prefetch=1,
                grid=(num_tiles,),
                in_specs=[
                    # Table stays in HBM; rows are DMA'd manually.
                    pl.BlockSpec(memory_space=pl.ANY),
                ],
                out_specs=pl.BlockSpec((T, E), lambda i, ids_sref: (i, 0)),
                scratch_shapes=[
                    pltpu.VMEM((T, E), table.dtype),
                    pltpu.SemaphoreType.DMA((_N_DMA_SLOTS,)),
                ],
            ),
            compiler_params=compiler_params,
        )(flat_ids, table)

    return out_flat[:N].reshape(B, S, E)


if __name__ == "__main__":
    # Small, forward-consistent shapes (embed_dim=128 as in the spec).
    vocab_size = 512
    embed_dim = 128
    batch, seq = 2, 8

    key = jax.random.PRNGKey(0)
    k_tab, k_ids = jax.random.split(key)

    # nn.Embedding default init: weight ~ N(0, 1), float32.
    table = jax.random.normal(k_tab, (vocab_size, embed_dim), dtype=jnp.float32)
    ids = jax.random.randint(k_ids, (batch, seq), 0, vocab_size, dtype=jnp.int32)

    ref = jnp.take(table, ids, axis=0) * math.sqrt(embed_dim)

    # Path 1: small table -> resident-in-VMEM gather.
    out_resident = jax.block_until_ready(token_embedding(ids, table))
    assert out_resident.shape == (batch, seq, embed_dim)
    assert out_resident.dtype == jnp.float32
    assert jnp.allclose(out_resident, ref, atol=1e-6, rtol=1e-6)

    # Path 2: force the large-table manual-DMA gather on the same data.
    out_dma = jax.block_until_ready(
        token_embedding(ids, table, force_dma_gather=True))
    assert out_dma.shape == (batch, seq, embed_dim)
    assert jnp.allclose(out_dma, ref, atol=1e-6, rtol=1e-6)

    print("KERNEL_OK")
</pallas_src>

<mosaic_0001>
module attributes {stable_mosaic.version = 11 : i64} {
  func.func @_embed_resident_kernel(%arg0: i32, %arg1: memref<16xi32, #tpu.memory_space<smem>>, %arg2: memref<512x128xf32, #tpu.memory_space<vmem>>, %arg3: memref<16x128xf32, #tpu.memory_space<vmem>>) attributes {dimension_semantics = [#tpu.dimension_semantics<parallel>], iteration_bounds = array<i64: 1>, scalar_prefetch = 1 : i64, scratch_operands = 0 : i64, tpu.core_type = #tpu.core_type<tc>, window_params = [{pipeline_mode = #tpu.pipeline_mode<synchronous>, transform_indices = @transform_0, window_bounds = array<i64: 512, 128>}, {transform_indices = @transform_1, window_bounds = array<i64: 16, 128>}]} {
    %c16_i32 = arith.constant 16 : i32
    %0 = arith.muli %arg0, %c16_i32 : i32
    %c0_i32 = arith.constant 0 : i32
    %c2_i32 = arith.constant 2 : i32
    %1 = arith.addi %c0_i32, %c2_i32 : i32
    %c1_i32 = arith.constant 1 : i32
    scf.for %arg4 = %c0_i32 to %1 step %c1_i32  : i32 {
      %c1_i32_1 = arith.constant 1 : i32
      %2 = arith.muli %arg4, %c1_i32_1 : i32
      %c0_i32_2 = arith.constant 0 : i32
      %3 = arith.addi %c0_i32_2, %2 : i32
      %c8_i32 = arith.constant 8 : i32
      %4 = arith.muli %3, %c8_i32 : i32
      %c0_i32_3 = arith.constant 0 : i32
      %5 = arith.addi %4, %c0_i32_3 : i32
      %6 = arith.addi %0, %5 : i32
      %7 = arith.index_cast %6 : i32 to index
      %8 = memref.load %arg1[%7] : memref<16xi32, #tpu.memory_space<smem>>
      %9 = arith.index_cast %8 : i32 to index
      %c0 = arith.constant 0 : index
      %10 = vector.load %arg2[%9, %c0] : memref<512x128xf32, #tpu.memory_space<vmem>>, vector<1x128xf32>
      %cst = arith.constant 11.3137083 : f32
      %11 = vector.broadcast %cst : f32 to vector<1x128xf32>
      %12 = arith.mulf %10, %11 : vector<1x128xf32>
      %13 = arith.index_cast %5 : i32 to index
      %c0_4 = arith.constant 0 : index
      %14 = vector.load %arg3[%13, %c0_4] : memref<16x128xf32, #tpu.memory_space<vmem>>, vector<1x128xf32>
      tpu.vector_store %arg3[%13, %c0_4], %12 {strides = array<i32>} : memref<16x128xf32, #tpu.memory_space<vmem>>, vector<1x128xf32>,
      %c1_i32_5 = arith.constant 1 : i32
      %15 = arith.addi %4, %c1_i32_5 : i32
      %16 = arith.addi %0, %15 : i32
      %17 = arith.index_cast %16 : i32 to index
      %18 = memref.load %arg1[%17] : memref<16xi32, #tpu.memory_space<smem>>
      %19 = arith.index_cast %18 : i32 to index
      %c0_6 = arith.constant 0 : index
      %20 = vector.load %arg2[%19, %c0_6] : memref<512x128xf32, #tpu.memory_space<vmem>>, vector<1x128xf32>
      %cst_7 = arith.constant 11.3137083 : f32
      %21 = vector.broadcast %cst_7 : f32 to vector<1x128xf32>
      %22 = arith.mulf %20, %21 : vector<1x128xf32>
      %23 = arith.index_cast %15 : i32 to index
      %c0_8 = arith.constant 0 : index
      %24 = vector.load %arg3[%23, %c0_8] : memref<16x128xf32, #tpu.memory_space<vmem>>, vector<1x128xf32>
      tpu.vector_store %arg3[%23, %c0_8], %22 {strides = array<i32>} : memref<16x128xf32, #tpu.memory_space<vmem>>, vector<1x128xf32>,
      %c2_i32_9 = arith.constant 2 : i32
      %25 = arith.addi %4, %c2_i32_9 : i32
      %26 = arith.addi %0, %25 : i32
      %27 = arith.index_cast %26 : i32 to index
      %28 = memref.load %arg1[%27] : memref<16xi32, #tpu.memory_space<smem>>
      %29 = arith.index_cast %28 : i32 to index
      %c0_10 = arith.constant 0 : index
      %30 = vector.load %arg2[%29, %c0_10] : memref<512x128xf32, #tpu.memory_space<vmem>>, vector<1x128xf32>
      %cst_11 = arith.constant 11.3137083 : f32
      %31 = vector.broadcast %cst_11 : f32 to vector<1x128xf32>
      %32 = arith.mulf %30, %31 : vector<1x128xf32>
      %33 = arith.index_cast %25 : i32 to index
      %c0_12 = arith.constant 0 : index
      %34 = vector.load %arg3[%33, %c0_12] : memref<16x128xf32, #tpu.memory_space<vmem>>, vector<1x128xf32>
      tpu.vector_store %arg3[%33, %c0_12], %32 {strides = array<i32>} : memref<16x128xf32, #tpu.memory_space<vmem>>, vector<1x128xf32>,
      %c3_i32 = arith.constant 3 : i32
      %35 = arith.addi %4, %c3_i32 : i32
      %36 = arith.addi %0, %35 : i32
      %37 = arith.index_cast %36 : i32 to index
      %38 = memref.load %arg1[%37] : memref<16xi32, #tpu.memory_space<smem>>
      %39 = arith.index_cast %38 : i32 to index
      %c0_13 = arith.constant 0 : index
      %40 = vector.load %arg2[%39, %c0_13] : memref<512x128xf32, #tpu.memory_space<vmem>>, vector<1x128xf32>
      %cst_14 = arith.constant 11.3137083 : f32
      %41 = vector.broadcast %cst_14 : f32 to vector<1x128xf32>
      %42 = arith.mulf %40, %41 : vector<1x128xf32>
      %43 = arith.index_cast %35 : i32 to index
      %c0_15 = arith.constant 0 : index
      %44 = vector.load %arg3[%43, %c0_15] : memref<16x128xf32, #tpu.memory_space<vmem>>, vector<1x128xf32>
      tpu.vector_store %arg3[%43, %c0_15], %42 {strides = array<i32>} : memref<16x128xf32, #tpu.memory_space<vmem>>, vector<1x128xf32>,
      %c4_i32 = arith.constant 4 : i32
      %45 = arith.addi %4, %c4_i32 : i32
      %46 = arith.addi %0, %45 : i32
      %47 = arith.index_cast %46 : i32 to index
      %48 = memref.load %arg1[%47] : memref<16xi32, #tpu.memory_space<smem>>
      %49 = arith.index_cast %48 : i32 to index
      %c0_16 = arith.constant 0 : index
      %50 = vector.load %arg2[%49, %c0_16] : memref<512x128xf32, #tpu.memory_space<vmem>>, vector<1x128xf32>
      %cst_17 = arith.constant 11.3137083 : f32
      %51 = vector.broadcast %cst_17 : f32 to vector<1x128xf32>
      %52 = arith.mulf %50, %51 : vector<1x128xf32>
      %53 = arith.index_cast %45 : i32 to index
      %c0_18 = arith.constant 0 : index
      %54 = vector.load %arg3[%53, %c0_18] : memref<16x128xf32, #tpu.memory_space<vmem>>, vector<1x128xf32>
      tpu.vector_store %arg3[%53, %c0_18], %52 {strides = array<i32>} : memref<16x128xf32, #tpu.memory_space<vmem>>, vector<1x128xf32>,
      %c5_i32 = arith.constant 5 : i32
      %55 = arith.addi %4, %c5_i32 : i32
      %56 = arith.addi %0, %55 : i32
      %57 = arith.index_cast %56 : i32 to index
      %58 = memref.load %arg1[%57] : memref<16xi32, #tpu.memory_space<smem>>
      %59 = arith.index_cast %58 : i32 to index
      %c0_19 = arith.constant 0 : index
      %60 = vector.load %arg2[%59, %c0_19] : memref<512x128xf32, #tpu.memory_space<vmem>>, vector<1x128xf32>
      %cst_20 = arith.constant 11.3137083 : f32
      %61 = vector.broadcast %cst_20 : f32 to vector<1x128xf32>
      %62 = arith.mulf %60, %61 : vector<1x128xf32>
      %63 = arith.index_cast %55 : i32 to index
      %c0_21 = arith.constant 0 : index
      %64 = vector.load %arg3[%63, %c0_21] : memref<16x128xf32, #tpu.memory_space<vmem>>, vector<1x128xf32>
      tpu.vector_store %arg3[%63, %c0_21], %62 {strides = array<i32>} : memref<16x128xf32, #tpu.memory_space<vmem>>, vector<1x128xf32>,
      %c6_i32 = arith.constant 6 : i32
      %65 = arith.addi %4, %c6_i32 : i32
      %66 = arith.addi %0, %65 : i32
      %67 = arith.index_cast %66 : i32 to index
      %68 = memref.load %arg1[%67] : memref<16xi32, #tpu.memory_space<smem>>
      %69 = arith.index_cast %68 : i32 to index
      %c0_22 = arith.constant 0 : index
      %70 = vector.load %arg2[%69, %c0_22] : memref<512x128xf32, #tpu.memory_space<vmem>>, vector<1x128xf32>
      %cst_23 = arith.constant 11.3137083 : f32
      %71 = vector.broadcast %cst_23 : f32 to vector<1x128xf32>
      %72 = arith.mulf %70, %71 : vector<1x128xf32>
      %73 = arith.index_cast %65 : i32 to index
      %c0_24 = arith.constant 0 : index
      %74 = vector.load %arg3[%73, %c0_24] : memref<16x128xf32, #tpu.memory_space<vmem>>, vector<1x128xf32>
      tpu.vector_store %arg3[%73, %c0_24], %72 {strides = array<i32>} : memref<16x128xf32, #tpu.memory_space<vmem>>, vector<1x128xf32>,
      %c7_i32 = arith.constant 7 : i32
      %75 = arith.addi %4, %c7_i32 : i32
      %76 = arith.addi %0, %75 : i32
      %77 = arith.index_cast %76 : i32 to index
      %78 = memref.load %arg1[%77] : memref<16xi32, #tpu.memory_space<smem>>
      %79 = arith.index_cast %78 : i32 to index
      %c0_25 = arith.constant 0 : index
      %80 = vector.load %arg2[%79, %c0_25] : memref<512x128xf32, #tpu.memory_space<vmem>>, vector<1x128xf32>
      %cst_26 = arith.constant 11.3137083 : f32
      %81 = vector.broadcast %cst_26 : f32 to vector<1x128xf32>
      %82 = arith.mulf %80, %81 : vector<1x128xf32>
      %83 = arith.index_cast %75 : i32 to index
      %c0_27 = arith.constant 0 : index
      %84 = vector.load %arg3[%83, %c0_27] : memref<16x128xf32, #tpu.memory_space<vmem>>, vector<1x128xf32>
      tpu.vector_store %arg3[%83, %c0_27], %82 {strides = array<i32>} : memref<16x128xf32, #tpu.memory_space<vmem>>, vector<1x128xf32>,
    }
    %c2_i32_0 = arith.constant 2 : i32
    return
  }
  func.func @transform_0(%arg0: i32, %arg1: memref<16xi32, #tpu.memory_space<smem>>) -> (i32, i32) {
    %c0_i32 = arith.constant 0 : i32
    %c0_i32_0 = arith.constant 0 : i32
    %c0_i32_1 = arith.constant 0 : i32
    return %c0_i32, %c0_i32_0 : i32, i32
  }
  func.func @transform_1(%arg0: i32, %arg1: memref<16xi32, #tpu.memory_space<smem>>) -> (i32, i32) {
    %c0_i32 = arith.constant 0 : i32
    %c0_i32_0 = arith.constant 0 : i32
    return %arg0, %c0_i32 : i32, i32
  }
}

</mosaic_0001>

<bundles_post_ra>
// kernel: tpu_custom_call.1
= control target key start
LH: loop header
LB: loop body
LE: loop exit
PB: predicated region body
PF: predicated region fallthrough
CT: control target
= control target key end

     0   :  { %s262_s12 = smov [#allocation3]   ;;  %s306_s0 = inlined_call_operand.hbm [shape: s32[16], index: 0, kind: input, shape index: {}]   ;;  %s307_s1 = inlined_call_operand.hbm [shape: f32[512,128], index: 1, kind: input, shape index: {}]   ;;  %s308_s2 = inlined_call_operand.hbm [shape: f32[16,128], index: 2, kind: output, shape index: {}]  }
   0x1   :  { %s8_s11 = sshll.u32 %s306_s0, 4  ;;  %s9_s11 = int_to_ptr.hbm [resolvable:$true] %s8_s11 }
   0x2   :  { %11 = dma.hbm_to_smem %s9_s11, 16, %s262_s12, [#allocation2] }
   0x3   :  { %252 = dma.done.wait [#allocation2], 16 }
   0x4   :  { %253 = vsyncadd [#allocation2], 4294967280 }
   0x5   :  { %14 = sfence }
   0x6   :  { %15 = vsyncpa [#allocation5], 0 }
   0x7   :  { %16 = vsyncpa [#allocation6], 0  ;;  %s21_s15 = sshll.u32 %s307_s1, 4  ;;  %s263_s16 = smov [#allocation4]   ;;  %s22_s15 = int_to_ptr.hbm [resolvable:$true] %s21_s15 }
   0x8   :  { %s23_s17 = sshll.u32 %s263_s16, 4  ;;  %s264_s18 = smov 128   ;;  %s24_s17 = int_to_ptr.vmem [resolvable:$true] %s23_s17 }
   0x9   :  { %s265_s19 = smov 8  }
   0xa   :  { %29 = dma.hbm_to_vmem [thread:$0]  %s22_s15, 8192, %s24_s17, [#allocation5], %s264_s18, %s264_s18, %s265_s19  }
   0xb   :  { %254 = dma.done.wait [#allocation5], 8192  }
   0xc   :  { %255 = vsyncadd [#allocation5], 4294959104  ;;  %s291_s0 = smov 0  }
   0xd LB: > { %s160_s1 = sshll.u32 %s260_s0, 3  ;;  %s40_s0 = sadd.s32 1, %s260_s0   ;;  %s260_s0 = sphi %s291_s0, %s40_s0  }
   0xe   : > { %s43_s20 = sld [smem:[#allocation3 + %s160_s1]]  ;;  %s49_s21 = sadd.s32 1, %s160_s1 }
   0xf   : > { %s57_s22 = sadd.s32 2, %s160_s1  ;;  %s51_s23 = sld [smem:[#allocation3 + %s49_s21]] }
  0x10   : > { %s65_s24 = sadd.s32 3, %s160_s1  ;;  %s59_s25 = sld [smem:[#allocation3 + %s57_s22]] }
  0x11   : > { %s73_s26 = sadd.s32 4, %s160_s1  ;;  %s67_s27 = sld [smem:[#allocation3 + %s65_s24]] }
  0x12   : > { %s81_s28 = sadd.s32 5, %s160_s1  ;;  %s75_s29 = sld [smem:[#allocation3 + %s73_s26]] }
  0x13   : > { %s89_s30 = sadd.s32 6, %s160_s1  ;;  %s83_s3 = sld [smem:[#allocation3 + %s81_s28]] }
  0x14   : > { %s44_s4 = scalar_lea.vmem [#allocation4], %s43_s20  ;;  %s91_s5 = sld [smem:[#allocation3 + %s89_s30]] }
  0x15   : > { %v45_v0 = vld [vmem:[%s44_s4] sm:$0x1]  ;;  %s97_s6 = sadd.s32 7, %s160_s1  ;;  %s52_s8 = scalar_lea.vmem [#allocation4], %s51_s23 }
  0x16   : > { %v46_v1 = vmul.f32 11.313708, %v45_v0  ;;  %s99_s7 = sld [smem:[#allocation3 + %s97_s6]]  ;;  %v53_v2 = vld [vmem:[%s52_s8] sm:$0x1]  ;;  %s47_s9 = scalar_lea.vmem [#allocation7], %s160_s1 }
  0x17   : > { %v54_v3 = vmul.f32 11.313708, %v53_v2  ;;  %s60_s10 = scalar_lea.vmem [#allocation4], %s59_s25  ;;  %s68_s11 = scalar_lea.vmem [#allocation4], %s67_s27 }
  0x18   : > { %48 = vst [vmem:[%s47_s9] sm:$0x1] %v46_v1  ;;  %v61_v4 = vld [vmem:[%s60_s10] sm:$0x1]  ;;  %s76_s12 = scalar_lea.vmem [#allocation4], %s75_s29  ;;  %p37_p0 = scmp.ge.s32.totalorder %s40_s0, 2  }
  0x19   : > { %v62_v5 = vmul.f32 11.313708, %v61_v4  ;;  %v69_v6 = vld [vmem:[%s68_s11] sm:$0x1]  ;;  %162 = vst [vmem:[%s47_s9 + $0x1] sm:$0x1] %v54_v3 }
  0x1a   : > { %v70_v7 = vmul.f32 11.313708, %v69_v6  ;;  %v77_v8 = vld [vmem:[%s76_s12] sm:$0x1]  ;;  %s84_s13 = scalar_lea.vmem [#allocation4], %s83_s3  ;;  %s92_s14 = scalar_lea.vmem [#allocation4], %s91_s5 }
  0x1b   : > { %164 = vst [vmem:[%s47_s9 + $0x2] sm:$0x1] %v62_v5  ;;  %v78_v9 = vmul.f32 11.313708, %v77_v8  ;;  %v85_v10 = vld [vmem:[%s84_s13] sm:$0x1] }
  0x1c   : > { %166 = vst [vmem:[%s47_s9 + $0x3] sm:$0x1] %v70_v7  ;;  %v93_v11 = vld [vmem:[%s92_s14] sm:$0x1]  ;;  %v86_v12 = vmul.f32 11.313708, %v85_v10 }
  0x1d   : > { %168 = vst [vmem:[%s47_s9 + $0x4] sm:$0x1] %v78_v9  ;;  %v94_v13 = vmul.f32 11.313708, %v93_v11  ;;  %s100_s15 = scalar_lea.vmem [#allocation4], %s99_s7  ;;  %39 = sbr.rel (!%p37_p0) target bundleno = 13 (0xd), region = 51 }
  0x1e   : > { %170 = vst [vmem:[%s47_s9 + $0x5] sm:$0x1] %v86_v12  ;;  %v101_v14 = vld [vmem:[%s100_s15] sm:$0x1]  ;;  %s111_s1 = sshll.u32 (%p37_p0), %s308_s2, 4  ;;  %s266_s20 = smov (%p37_p0), [#allocation7]   ;;  %s112_s1 = int_to_ptr.hbm [resolvable:$true] %s111_s1 }
  0x1f   : > { %172 = vst [vmem:[%s47_s9 + $0x6] sm:$0x1] %v94_v13  ;;  %v102_v15 = vmul.f32 11.313708, %v101_v14  ;;  %s109_s21 = sshll.u32 (%p37_p0), %s266_s20, 4  ;;  %s110_s21 = int_to_ptr.vmem [resolvable:$true] %s109_s21 }
  0x21   : > { %174 = vst [vmem:[%s47_s9 + $0x7] sm:$0x1] %v102_v15 }
  0x22   :  { %117 = dma.vmem_to_hbm [thread:$0]  %s110_s21, 256, %s112_s1, [#allocation6], %s264_s18, %s264_s18, %s265_s19  }
  0x23   :  { %256 = dma.done.wait [#allocation6], 256  }
  0x24   :  { %257 = vsyncadd [#allocation6], 4294967040 }
  0x25   :  { %122 = vsyncpa [#allocation5], 1 }
  0x26   :  { %123 = vsyncpa [#allocation6], 1 }

</bundles_post_ra>
